<compile_context>
chip_gen: v6e
topology: v6e:2x2x1
jax: 0.10.0
libtpu: 0.0.40
codegen_flags: <defaults>
</compile_context>

<pallas_src>
import math

import jax
import jax.numpy as jnp
from jax.experimental import pallas as pl
from jax.experimental.pallas import tpu as pltpu

RHYTHM_WEIGHT = 1.0
HARMONY_WEIGHT = 1.0
MELODY_WEIGHT = 1.0

NOTE_OFF_START = 128
TIME_SHIFT_START = 256
VELOCITY_START = 768

# ~1 MiB int32 input block per grid step; live intermediates ~8-12 MiB.
_MAX_TILE_ELEMS = 256 * 1024


def _round_up(x: int, m: int) -> int:
    return (x + m - 1) // m * m


def _count_kernel(tok_ref, out_ref):
    """Per-tile counts of (rhythm changes, harsh intervals, large leaps)."""
    tok = tok_ref[...]                       # [R, T] int32
    T = tok.shape[-1]

    # Per-token ("current") features, computed once per element on the VPU.
    ts = jnp.where((tok >= TIME_SHIFT_START) & (tok < VELOCITY_START), 1, 0)
    p = jnp.where(tok < NOTE_OFF_START, tok, 0)
    p_f = p.astype(jnp.float32)
    # pitch class (mod 12) via f32: exact because masked pitches are < 128 and
    # float32(1/12) rounds up, so floor(p * (1/12)) == p // 12 for p in [0,127].
    pc = p_f - jnp.floor(p_f * (1.0 / 12.0)) * 12.0

    # "Next-token" features via single-lane left rotation on the (idle) XLU.
    # The wrap-around pair (col T-1 -> col 0) is subtracted in the wrapper.
    ts_n = pltpu.roll(ts, shift=T - 1, axis=1)
    p_f_n = pltpu.roll(p_f, shift=T - 1, axis=1)
    pc_n = pltpu.roll(pc, shift=T - 1, axis=1)

    rhythm = ts != ts_n
    interval = jnp.abs(pc - pc_n)
    harsh = (interval == 6.0) | (interval == 11.0)
    leap = jnp.abs(p_f - p_f_n) > 12.0

    # Exact integer counts (f32 is exact up to 2^24; tiles are <= 2^18 elems).
    r_cnt = jnp.sum(rhythm.astype(jnp.float32))
    h_cnt = jnp.sum(harsh.astype(jnp.float32))
    l_cnt = jnp.sum(leap.astype(jnp.float32))

    # Lane-dense (8,128) output block per tile: counts in lanes 0/1/2.
    lane = jax.lax.broadcasted_iota(jnp.int32, (8, 128), 1)
    out_ref[0] = (jnp.where(lane == 0, r_cnt, 0.0)
                  + jnp.where(lane == 1, h_cnt, 0.0)
                  + jnp.where(lane == 2, l_cnt, 0.0))


def _pair_counts(curr, nxt):
    """(rhythm, harsh, leap) counts for pairs curr[i] -> nxt[i]. Tiny arrays."""
    curr = curr.astype(jnp.int32)
    nxt = nxt.astype(jnp.int32)
    ts_c = (curr >= TIME_SHIFT_START) & (curr < VELOCITY_START)
    ts_n = (nxt >= TIME_SHIFT_START) & (nxt < VELOCITY_START)
    rhythm = ts_c != ts_n
    p_c = jnp.where(curr < NOTE_OFF_START, curr, 0)
    p_n = jnp.where(nxt < NOTE_OFF_START, nxt, 0)
    interval = jnp.abs(p_c % 12 - p_n % 12)
    harsh = (interval == 6) | (interval == 11)
    leap = jnp.abs(p_n - p_c) > 12
    f = jnp.float32
    return (jnp.sum(rhythm.astype(f)),
            jnp.sum(harsh.astype(f)),
            jnp.sum(leap.astype(f)))


def musical_perceptual_loss(tokens: jax.Array,
                            *,
                            rhythm_weight: float = RHYTHM_WEIGHT,
                            harmony_weight: float = HARMONY_WEIGHT,
                            melody_weight: float = MELODY_WEIGHT,
                            max_tile_elems: int = _MAX_TILE_ELEMS) -> jax.Array:
    """tokens: [batch, seq] integer array. Returns scalar float32 loss."""
    B, S = tokens.shape
    if S < 2:
        raise ValueError("seq_len must be >= 2 (diff over an empty axis is undefined).")
    tokens = tokens.astype(jnp.int32)          # no-op if already int32

    # Fold seq onto the sublane axis so B*k is a multiple of 8 (full vregs).
    k = 8 // math.gcd(B, 8)                    # 1, 2, 4 or 8
    R = B * k
    c_needed = -(-S // k)                      # ceil(S / k)
    C = _round_up(c_needed, 128)               # lane dim multiple of 128

    if R * C <= max_tile_elems:
        T = C                                  # single tile covers everything
    else:
        T = max(128, (max_tile_elems // R) // 128 * 128)
        C = _round_up(C, T)
    n_tiles = C // T
    S_pad = k * C

    if S_pad != S:
        # Edge padding: every pair touching a padded position is (x, x) and
        # contributes exactly zero, so no validity masking is needed anywhere.
        tokens_p = jnp.pad(tokens, ((0, 0), (0, S_pad - S)), mode="edge")
    else:
        tokens_p = tokens
    folded = tokens_p.reshape(R, C)            # free row-major reshape

    out = pl.pallas_call(
        _count_kernel,
        out_shape=jax.ShapeDtypeStruct((n_tiles, 8, 128), jnp.float32),
        grid=(n_tiles,),
        in_specs=[pl.BlockSpec((R, T), lambda j: (0, j))],
        out_specs=pl.BlockSpec((1, 8, 128), lambda j: (j, 0, 0)),
        compiler_params=pltpu.CompilerParams(
            dimension_semantics=("parallel",),       # no cross-tile carry
            vmem_limit_bytes=32 * 1024 * 1024),
        cost_estimate=pl.CostEstimate(flops=30 * R * C,
                                      transcendentals=0,
                                      bytes_accessed=4 * R * C),
    )(folded)

    r_cnt = jnp.sum(out[:, 0, 0])
    h_cnt = jnp.sum(out[:, 0, 1])
    l_cnt = jnp.sum(out[:, 0, 2])

    # ---- tiny boundary corrections in plain JAX (O(R * n_tiles) elements) ----
    first_cols = folded[:, ::T]                # [R, n_tiles]
    last_cols = folded[:, T - 1::T]            # [R, n_tiles]

    # (a) subtract each tile's spurious wrap-around pair (last col -> first col)
    wr, wh, wl = _pair_counts(last_cols, first_cols)
    r_cnt, h_cnt, l_cnt = r_cnt - wr, h_cnt - wh, l_cnt - wl

    # (b) add the true pairs straddling column-tile boundaries
    if n_tiles > 1:
        cr, ch, cl = _pair_counts(last_cols[:, :-1], first_cols[:, 1:])
        r_cnt, h_cnt, l_cnt = r_cnt + cr, h_cnt + ch, l_cnt + cl

    # (c) add the true pairs straddling fold-row boundaries
    if k > 1:
        row_last = last_cols[:, -1].reshape(B, k)
        row_first = first_cols[:, 0].reshape(B, k)
        fr, fh, fl = _pair_counts(row_last[:, :-1], row_first[:, 1:])
        r_cnt, h_cnt, l_cnt = r_cnt + fr, h_cnt + fh, l_cnt + fl

    inv_pairs = 1.0 / float(B * (S - 1))
    inv_bs = 1.0 / float(B * S)
    return (float(rhythm_weight) * r_cnt * inv_pairs
            + float(harmony_weight) * h_cnt * inv_bs
            + float(melody_weight) * l_cnt * inv_pairs)


def _reference_loss(tokens: jax.Array) -> jax.Array:
    """Pure-JAX reference mirroring the PyTorch module exactly."""
    tokens = tokens.astype(jnp.int32)
    B, S = tokens.shape
    ts = ((tokens >= TIME_SHIFT_START) & (tokens < VELOCITY_START)).astype(jnp.float32)
    rhythm = jnp.mean(jnp.abs(jnp.diff(ts, axis=1)))

    note_on = tokens < NOTE_OFF_START
    pitches = tokens * note_on.astype(jnp.int32)
    pc = pitches % 12
    interval = jnp.abs(pc[:, :-1] - pc[:, 1:])
    harsh = ((interval == 6) | (interval == 11)).astype(jnp.float32)
    harmony = jnp.sum(jnp.mean(harsh, axis=0)) / S

    pdiff = jnp.diff(pitches.astype(jnp.float32), axis=1)
    melody = jnp.mean((jnp.abs(pdiff) > 12).astype(jnp.float32))

    return (RHYTHM_WEIGHT * rhythm
            + HARMONY_WEIGHT * harmony
            + MELODY_WEIGHT * melody)


if __name__ == "__main__":
    vocab_size = 774
    key = jax.random.PRNGKey(0)

    # 1) Small shape matching the module's expected input [batch, seq].
    tokens = jax.random.randint(key, (2, 16), 0, vocab_size, dtype=jnp.int32)
    loss = jax.block_until_ready(musical_perceptual_loss(tokens))
    ref = jax.block_until_ready(_reference_loss(tokens))
    assert jnp.allclose(loss, ref, atol=1e-5, rtol=1e-5), (loss, ref)

    # 2) Multi-tile path: exercises wrap / cross-tile / fold-boundary
    #    corrections and edge padding (tile forced small for the test).
    tokens2 = jax.random.randint(jax.random.PRNGKey(1), (2, 700), 0, vocab_size,
                                 dtype=jnp.int32)
    loss2 = jax.block_until_ready(
        musical_perceptual_loss(tokens2, max_tile_elems=1024))
    ref2 = jax.block_until_ready(_reference_loss(tokens2))
    assert jnp.allclose(loss2, ref2, atol=1e-5, rtol=1e-5), (loss2, ref2)

    # 3) Odd batch (k=8 fold) with heavy edge padding.
    tokens3 = jax.random.randint(jax.random.PRNGKey(2), (3, 37), 0, vocab_size,
                                 dtype=jnp.int32)
    loss3 = jax.block_until_ready(musical_perceptual_loss(tokens3))
    ref3 = jax.block_until_ready(_reference_loss(tokens3))
    assert jnp.allclose(loss3, ref3, atol=1e-5, rtol=1e-5), (loss3, ref3)

    # 4) Batch already a multiple of 8 (k=1, no fold, no pad).
    tokens4 = jax.random.randint(jax.random.PRNGKey(3), (8, 256), 0, vocab_size,
                                 dtype=jnp.int32)
    loss4 = jax.block_until_ready(musical_perceptual_loss(tokens4))
    ref4 = jax.block_until_ready(_reference_loss(tokens4))
    assert jnp.allclose(loss4, ref4, atol=1e-5, rtol=1e-5), (loss4, ref4)

    print("KERNEL_OK")
</pallas_src>

<mosaic_0001>
module attributes {stable_mosaic.version = 11 : i64} {
  func.func @_count_kernel(%arg0: i32, %arg1: memref<8x128xi32, #tpu.memory_space<vmem>>, %arg2: memref<1x8x128xf32, #tpu.memory_space<vmem>>) attributes {dimension_semantics = [#tpu.dimension_semantics<parallel>], iteration_bounds = array<i64: 1>, scalar_prefetch = 0 : i64, scratch_operands = 0 : i64, tpu.core_type = #tpu.core_type<tc>, window_params = [{transform_indices = @transform_0, window_bounds = array<i64: 8, 128>}, {transform_indices = @transform_1, window_bounds = array<i64: 1, 8, 128>}]} {
    %c0 = arith.constant 0 : index
    %c0_0 = arith.constant 0 : index
    %0 = vector.load %arg1[%c0, %c0_0] : memref<8x128xi32, #tpu.memory_space<vmem>>, vector<8x128xi32>
    %c256_i32 = arith.constant 256 : i32
    %1 = vector.broadcast %c256_i32 : i32 to vector<8x128xi32>
    %2 = arith.cmpi sge, %0, %1 : vector<8x128xi32>
    %c768_i32 = arith.constant 768 : i32
    %3 = vector.broadcast %c768_i32 : i32 to vector<8x128xi32>
    %4 = arith.cmpi slt, %0, %3 : vector<8x128xi32>
    %5 = arith.andi %2, %4 : vector<8x128xi1>
    %c1_i32 = arith.constant 1 : i32
    %c0_i32 = arith.constant 0 : i32
    %6 = vector.broadcast %c1_i32 : i32 to vector<8x128xi32>
    %7 = vector.broadcast %c0_i32 : i32 to vector<8x128xi32>
    %8 = arith.select %5, %6, %7 : vector<8x128xi1>, vector<8x128xi32>
    %c128_i32 = arith.constant 128 : i32
    %9 = vector.broadcast %c128_i32 : i32 to vector<8x128xi32>
    %10 = arith.cmpi slt, %0, %9 : vector<8x128xi32>
    %c0_i32_1 = arith.constant 0 : i32
    %11 = vector.broadcast %c0_i32_1 : i32 to vector<8x128xi32>
    %12 = arith.select %10, %0, %11 : vector<8x128xi1>, vector<8x128xi32>
    %13 = arith.sitofp %12 : vector<8x128xi32> to vector<8x128xf32>
    %cst = arith.constant 0.0833333358 : f32
    %14 = vector.broadcast %cst : f32 to vector<8x128xf32>
    %15 = arith.mulf %13, %14 : vector<8x128xf32>
    %16 = math.floor %15 : vector<8x128xf32>
    %cst_2 = arith.constant 1.200000e+01 : f32
    %17 = vector.broadcast %cst_2 : f32 to vector<8x128xf32>
    %18 = arith.mulf %16, %17 : vector<8x128xf32>
    %19 = arith.subf %13, %18 : vector<8x128xf32>
    %c127_i32 = arith.constant 127 : i32
    %20 = tpu.dynamic_rotate %8 by %c127_i32 dim 1 : vector<8x128xi32>, i32 -> vector<8x128xi32>
    %c127_i32_3 = arith.constant 127 : i32
    %21 = tpu.dynamic_rotate %13 by %c127_i32_3 dim 1 : vector<8x128xf32>, i32 -> vector<8x128xf32>
    %c127_i32_4 = arith.constant 127 : i32
    %22 = tpu.dynamic_rotate %19 by %c127_i32_4 dim 1 : vector<8x128xf32>, i32 -> vector<8x128xf32>
    %23 = arith.cmpi ne, %8, %20 : vector<8x128xi32>
    %24 = arith.subf %19, %22 : vector<8x128xf32>
    %25 = math.absf %24 : vector<8x128xf32>
    %cst_5 = arith.constant 6.000000e+00 : f32
    %26 = vector.broadcast %cst_5 : f32 to vector<8x128xf32>
    %27 = arith.cmpf oeq, %25, %26 : vector<8x128xf32>
    %cst_6 = arith.constant 1.100000e+01 : f32
    %28 = vector.broadcast %cst_6 : f32 to vector<8x128xf32>
    %29 = arith.cmpf oeq, %25, %28 : vector<8x128xf32>
    %30 = arith.ori %27, %29 : vector<8x128xi1>
    %31 = arith.subf %13, %21 : vector<8x128xf32>
    %32 = math.absf %31 : vector<8x128xf32>
    %cst_7 = arith.constant 1.200000e+01 : f32
    %33 = vector.broadcast %cst_7 : f32 to vector<8x128xf32>
    %34 = arith.cmpf ogt, %32, %33 : vector<8x128xf32>
    %35 = arith.extui %23 : vector<8x128xi1> to vector<8x128xi32>
    %36 = arith.sitofp %35 : vector<8x128xi32> to vector<8x128xf32>
    %37 = vector.shape_cast %36 : vector<8x128xf32> to vector<1x8x128xf32>
    %cst_8 = arith.constant dense<0.000000e+00> : vector<1xf32>
    %38 = vector.multi_reduction <add>, %37, %cst_8 [1, 2] : vector<1x8x128xf32> to vector<1xf32>
    %39 = vector.shape_cast %38 : vector<1xf32> to vector<1x1x1xf32>
    %40 = vector.extract %39[0, 0, 0] : f32 from vector<1x1x1xf32>
    %41 = arith.extui %30 : vector<8x128xi1> to vector<8x128xi32>
    %42 = arith.sitofp %41 : vector<8x128xi32> to vector<8x128xf32>
    %43 = vector.shape_cast %42 : vector<8x128xf32> to vector<1x8x128xf32>
    %cst_9 = arith.constant dense<0.000000e+00> : vector<1xf32>
    %44 = vector.multi_reduction <add>, %43, %cst_9 [1, 2] : vector<1x8x128xf32> to vector<1xf32>
    %45 = vector.shape_cast %44 : vector<1xf32> to vector<1x1x1xf32>
    %46 = vector.extract %45[0, 0, 0] : f32 from vector<1x1x1xf32>
    %47 = arith.extui %34 : vector<8x128xi1> to vector<8x128xi32>
    %48 = arith.sitofp %47 : vector<8x128xi32> to vector<8x128xf32>
    %49 = vector.shape_cast %48 : vector<8x128xf32> to vector<1x8x128xf32>
    %cst_10 = arith.constant dense<0.000000e+00> : vector<1xf32>
    %50 = vector.multi_reduction <add>, %49, %cst_10 [1, 2] : vector<1x8x128xf32> to vector<1xf32>
    %51 = vector.shape_cast %50 : vector<1xf32> to vector<1x1x1xf32>
    %52 = vector.extract %51[0, 0, 0] : f32 from vector<1x1x1xf32>
    %53 = tpu.iota {dimensions = array<i32: 1>} : vector<8x128xi32>
    %c0_i32_11 = arith.constant 0 : i32
    %54 = vector.broadcast %c0_i32_11 : i32 to vector<8x128xi32>
    %55 = arith.cmpi eq, %53, %54 : vector<8x128xi32>
    %cst_12 = arith.constant 0.000000e+00 : f32
    %56 = vector.broadcast %40 : f32 to vector<8x128xf32>
    %57 = vector.broadcast %cst_12 : f32 to vector<8x128xf32>
    %58 = arith.select %55, %56, %57 : vector<8x128xi1>, vector<8x128xf32>
    %c1_i32_13 = arith.constant 1 : i32
    %59 = vector.broadcast %c1_i32_13 : i32 to vector<8x128xi32>
    %60 = arith.cmpi eq, %53, %59 : vector<8x128xi32>
    %cst_14 = arith.constant 0.000000e+00 : f32
    %61 = vector.broadcast %46 : f32 to vector<8x128xf32>
    %62 = vector.broadcast %cst_14 : f32 to vector<8x128xf32>
    %63 = arith.select %60, %61, %62 : vector<8x128xi1>, vector<8x128xf32>
    %64 = arith.addf %58, %63 : vector<8x128xf32>
    %c2_i32 = arith.constant 2 : i32
    %65 = vector.broadcast %c2_i32 : i32 to vector<8x128xi32>
    %66 = arith.cmpi eq, %53, %65 : vector<8x128xi32>
    %cst_15 = arith.constant 0.000000e+00 : f32
    %67 = vector.broadcast %52 : f32 to vector<8x128xf32>
    %68 = vector.broadcast %cst_15 : f32 to vector<8x128xf32>
    %69 = arith.select %66, %67, %68 : vector<8x128xi1>, vector<8x128xf32>
    %70 = arith.addf %64, %69 : vector<8x128xf32>
    %c0_16 = arith.constant 0 : index
    %c0_17 = arith.constant 0 : index
    %c0_18 = arith.constant 0 : index
    %71 = vector.load %arg2[%c0_16, %c0_17, %c0_18] : memref<1x8x128xf32, #tpu.memory_space<vmem>>, vector<1x8x128xf32>
    %72 = vector.shape_cast %71 : vector<1x8x128xf32> to vector<8x128xf32>
    %73 = vector.shape_cast %70 : vector<8x128xf32> to vector<1x8x128xf32>
    tpu.vector_store %arg2[%c0_16, %c0_17, %c0_18], %73 {strides = array<i32>} : memref<1x8x128xf32, #tpu.memory_space<vmem>>, vector<1x8x128xf32>,
    return
  }
  func.func @transform_0(%arg0: i32) -> (i32, i32) {
    %c0_i32 = arith.constant 0 : i32
    %c0_i32_0 = arith.constant 0 : i32
    return %c0_i32, %arg0 : i32, i32
  }
  func.func @transform_1(%arg0: i32) -> (i32, i32, i32) {
    %c0_i32 = arith.constant 0 : i32
    %c0_i32_0 = arith.constant 0 : i32
    %c0_i32_1 = arith.constant 0 : i32
    return %arg0, %c0_i32, %c0_i32_0 : i32, i32, i32
  }
}

</mosaic_0001>

<bundles_post_ra>
// kernel: tpu_custom_call.1
= control target key start
LH: loop header
LB: loop body
LE: loop exit
PB: predicated region body
PF: predicated region fallthrough
CT: control target
= control target key end

     0   :  { %6 = vsyncpa [#allocation3], 0  ;;  %s191_s0 = inlined_call_operand.hbm [shape: s32[8,128], index: 0, kind: input, shape index: {}]   ;;  %s192_s1 = inlined_call_operand.hbm [shape: f32[1,8,128], index: 1, kind: output, shape index: {}]  }
   0x1   :  { %7 = vsyncpa [#allocation4], 0  ;;  %s170_s6 = smov [#allocation2]  }
   0x2   :  { %s14_s7 = sshll.u32 %s170_s6, 4  ;;  %s15_s7 = int_to_ptr.vmem [resolvable:$true] %s14_s7 }
   0x3   :  { %s134_s8 = scalar_lea.vmem %s15_s7, 128  ;;  %p139_p1 = scmp.lt.s32.totalorder %s15_s7, %s15_s7 }
   0x4   :  { %p135_p0 = scmp.ne.s32.totalorder %s15_s7, %s134_s8  ;;  %p140_p2 = scmp.lt.s32.totalorder %s134_s8, %s134_s8 }
   0x6   :  { %p141_p3 = por %p140_p2, %p139_p1 }
   0x8   :  { %p142_p4 = pnand %p141_p3, %p135_p0 }
   0xa   :  { %145 = shalt.err (!%p142_p4)
}
   0xb   :  { %17 = dma.hbm_to_vmem [thread:$0]  %s191_s0, 128, %s15_s7, [#allocation3]  }
   0xc   :  { %166 = dma.done.wait [#allocation3], 128  }
   0xd   :  { %167 = vsyncadd [#allocation3], 4294967168  ;;  %v21_v0 = vld [vmem:[#allocation2] sm:$0xff]  ;;  %v171_v3 = vmov 0   ;;  %s172_s11 = smov 127   ;;  %v173_v10 = vmov 0.0   ;;  %v81_v41 = vlaneseq }
   0xe   :  { %vm26_vm0 = vcmp.lt.s32.totalorder %v21_v0, 128  ;;  %v110_v1 = vcvt.s32.f32 %v21_v0  ;;  %vm22_vm1 = vcmp.ge.s32.totalorder %v21_v0, 256  ;;  %vm23_vm2 = vcmp.lt.s32.totalorder %v21_v0, 768  ;;  %s174_s14 = smov [#allocation5]  }
   0xf   :  { %vm24_vm3 = vmand %vm22_vm1, %vm23_vm2  ;;  %v82_v42 = vand.u32 127, %v81_v41  ;;  %s101_s15 = sshll.u32 %s174_s14, 4  ;;  %s102_s15 = int_to_ptr.vmem [resolvable:$true] %s101_s15 }
  0x10   :  { %v111_v2 = vsel %vm26_vm0, %v110_v1, 0.0  ;;  %v25_v4 = vsel %vm24_vm3, 1, %v171_v3  ;;  %s146_s16 = scalar_lea.vmem %s102_s15, 128  ;;  %p151_p6 = scmp.lt.s32.totalorder %s102_s15, %s102_s15 }
  0x11   :  { %v29_v5 = vmul.f32 0.083333336, %v111_v2  ;;  %33 = vrot.lane.b32.xlu1 %v25_v4, %s172_s11  ;;  %vm86_vm9 = vcmp.eq.s32.totalorder %v82_v42, 1  ;;  %vm83_vm10 = vcmp.eq.s32.totalorder %v82_v42, 0  ;;  %vm90_vm11 = vcmp.eq.s32.totalorder %v82_v42, 2  ;;  %p147_p5 = scmp.ne.s32.totalorder %s102_s15, %s146_s16  ;;  %p152_p7 = scmp.lt.s32.totalorder %s146_s16, %s146_s16 }
  0x13   :  { %v30_v6 = vfloor.f32 %v29_v5  ;;  %p153_p8 = por %p152_p7, %p151_p6 }
  0x15   :  { %v31_v7 = vmul.f32 12.0, %v30_v6  ;;  %p154_p9 = pnand %p153_p8, %p147_p5 }
  0x17   :  { %v32_v8 = vsub.f32 %v111_v2, %v31_v7 }
  0x19   :  { %37 = vrot.lane.b32.xlu0 %v32_v8, %s172_s11 }
  0x1d   :  { %35 = vrot.lane.b32.xlu0 %v111_v2, %s172_s11 }
  0x83   :  { %v34_v9 = vpop.permute.xlu1 %33 }
  0x84   :  { %vm39_vm4 = vcmp.ne.s32.totalorder %v25_v4, %v34_v9 }
  0x85   :  { %v112_v11 = vsel %vm39_vm4, 1.0, %v173_v10 }
  0x86   :  { %50 = vadd.xlane.f32.xlu1 %v112_v11 }
  0x8b   :  { %v38_v12 = vpop.permute.xlu0 %37 }
  0x8c   :  { %v40_v13 = vsub.f32 %v32_v8, %v38_v12 }
  0x8e   :  { %v41_v14 = vand.u32 2147483647, %v40_v13 }
  0x8f   :  { %v36_v15 = vpop.permute.xlu0 %35 }
  0x90   :  { %v45_v16 = vsub.f32 %v111_v2, %v36_v15  ;;  %vm42_vm5 = vcmp.eq.f32.partialorder %v41_v14, 6.0  ;;  %vm43_vm6 = vcmp.eq.f32.partialorder %v41_v14, 11.0 }
  0x91   :  { %vm44_vm7 = vmor %vm42_vm5, %vm43_vm6 }
  0x92   :  { %v46_v17 = vand.u32 2147483647, %v45_v16  ;;  %v113_v18 = vsel %vm44_vm7, 1.0, %v173_v10 }
  0x93   :  { %61 = vadd.xlane.f32.xlu0 %v113_v18 }
  0x94   :  { %vm47_vm8 = vcmp.gt.f32.partialorder %v46_v17, 12.0 }
  0x95   :  { %v114_v19 = vsel %vm47_vm8, 1.0, %v173_v10 }
  0x97   :  { %72 = vadd.xlane.f32.xlu0 %v114_v19 }
 0x10f   :  { %v51_v20 = vpop.xlane.xlu1 %50 }
 0x110   :  { %v52_v21 = vrot.slane %v51_v20, 4 }
 0x112   :  { %v53_v22 = vadd.f32 %v52_v21, %v51_v20 }
 0x114   :  { %v54_v23 = vrot.slane %v53_v22, 2 }
 0x116   :  { %v55_v24 = vadd.f32 %v54_v23, %v53_v22 }
 0x118   :  { %v56_v25 = vrot.slane %v55_v24, 1 }
 0x11a   :  { %v57_v26 = vadd.f32 %v56_v25, %v55_v24 }
 0x11c   :  { %v62_v27 = vpop.xlane.xlu0 %61  ;;  %115 = vpush %v57_v26 }
 0x11d   :  { %v63_v28 = vrot.slane %v62_v27, 4 }
 0x11f   :  { %v64_v29 = vadd.f32 %v63_v28, %v62_v27 }
 0x120   :  { %v73_v30 = vpop.xlane.xlu0 %72 }
 0x121   :  { %v65_v31 = vrot.slane %v64_v29, 2  ;;  %v74_v32 = vrot.slane %v73_v30, 4 }
 0x123   :  { %v75_v33 = vadd.f32 %v74_v32, %v73_v30  ;;  %v66_v34 = vadd.f32 %v65_v31, %v64_v29 }
 0x125   :  { %v76_v35 = vrot.slane %v75_v33, 2  ;;  %v67_v36 = vrot.slane %v66_v34, 1 }
 0x127   :  { %v77_v37 = vadd.f32 %v76_v35, %v75_v33  ;;  %v68_v38 = vadd.f32 %v67_v36, %v66_v34 }
 0x129   :  { %117 = vpush %v68_v38  ;;  %v78_v39 = vrot.slane %v77_v37, 1 }
 0x12b   :  { %v79_v40 = vadd.f32 %v78_v39, %v77_v37 }
 0x12d   :  { %119 = vpush %v79_v40 }
 0x14d   :  { %s116_s0 = spop %115 }
 0x14e   :  { %v84_v43 = vstv %s116_s0 }
 0x14f   :  { %v85_v46 = vsel %vm83_vm10, %v84_v43, 0.0 }
 0x15a   :  { %s118_s12 = spop %117 }
 0x15b   :  { %v87_v44 = vstv %s118_s12 }
 0x15c   :  { %v88_v45 = vsel %vm86_vm9, %v87_v44, 0.0 }
 0x15d   :  { %v89_v47 = vadd.f32 %v88_v45, %v85_v46 }
 0x15e   :  { %s120_s13 = spop %119 }
 0x15f   :  { %v91_v48 = vstv %s120_s13 }
 0x160   :  { %v92_v49 = vsel %vm90_vm11, %v91_v48, 0.0 }
 0x161   :  { %v93_v50 = vadd.f32 %v92_v49, %v89_v47 }
 0x163   :  { %94 = vst [vmem:[#allocation5] sm:$0xff] %v93_v50 }
 0x164   :  { %157 = shalt.err (!%p154_p9)
}
 0x165   :  { %104 = dma.vmem_to_hbm [thread:$0]  %s102_s15, 128, %s192_s1, [#allocation4]  }
 0x166   :  { %168 = dma.done.wait [#allocation4], 128  }
 0x167   :  { %169 = vsyncadd [#allocation4], 4294967168 }
 0x168   :  { %108 = vsyncpa [#allocation3], 1 }
 0x169   :  { %109 = vsyncpa [#allocation4], 1 }

</bundles_post_ra>
